<compile_context>
chip_gen: v7x
topology: tpu7x:2x2x1
jax: 0.10.0
libtpu: 0.0.40
codegen_flags: <defaults>
</compile_context>

<pallas_src>
import jax
import jax.numpy as jnp
from jax.experimental import pallas as pl
from jax.experimental.pallas import tpu as pltpu

BN_EPS = 1e-5
_LANE = 128
_SUB = 8


# ----------------------------- tiling helpers -----------------------------

def _vmem_capacity_bytes():
    try:
        info = pltpu.get_tpu_info()
        cap = int(getattr(info, "vmem_capacity_bytes", 0))
        if cap > 0:
            return cap
    except Exception:
        pass
    return 64 << 20  # v7x-safe fallback


def _divisors(n):
    return [d for d in range(1, n + 1) if n % d == 0]


def _pick_n_tile(n, per_n_bytes, budget):
    """Batch-first block fill.  Valid n_tile must divide N and satisfy the output
    block's (8,128) rule: multiple of 8, or the full N."""
    cands = sorted(d for d in _divisors(n) if d % _SUB == 0 or d == n)
    fitting = [d for d in cands if d * per_n_bytes <= budget]
    n_tile = fitting[-1] if fitting else cands[0]
    # Prefer >=2 iterations along the parallel N axis (feeds both v7x TensorCores and
    # gives the pipeline something to overlap) as long as blocks stay >= ~1 MiB.
    if n // n_tile < 2:
        smaller = [d for d in cands if n // d >= 2 and d * per_n_bytes >= (1 << 20)]
        if smaller:
            n_tile = smaller[-1]
    return n_tile


def _pick_c_tile(c, n_tile, hw, itemsize, budget):
    """C tile must divide C and respect sublane granularity (8 for f32, 16 for bf16),
    or be the full C."""
    sub = _SUB * max(1, 4 // itemsize)
    if c % sub != 0 or n_tile * c * hw * itemsize <= budget:
        return c
    best = sub
    for ct in range(sub, c + 1, sub):
        if c % ct == 0 and n_tile * ct * hw * itemsize <= budget:
            best = ct
    return best


# ------------------------------- the kernel -------------------------------

def _split_branch_kernel(x_ref, scale_ref, shift_ref, w_ref, b_ref, o_ref, acc_ref):
    """One 'split' classifier branch: C-tiled reduction over full-HW blocks.

    x_ref     : (n_tile, c_tile, HW)  feature-map chunk (f32 or bf16; HW on lanes)
    scale_ref : (c_tile, 1) f32       folded BN scale = gamma * rsqrt(var + eps)
    shift_ref : (c_tile, 1) f32       folded BN shift = beta - mean * scale
    w_ref     : (c_tile, Kpad) f32    Linear weight slice / (H*W), K padded to 128
    b_ref     : (1, Kpad) f32         Linear bias (K padded)
    o_ref     : (n_tile, Kpad) f32    logits (lane-dense store)
    acc_ref   : (n_tile, Kpad) f32    scratch: logits accumulator over C tiles
    """
    ci = pl.program_id(1)

    @pl.when(ci == 0)
    def _():
        acc_ref[...] = jnp.zeros_like(acc_ref)

    x = x_ref[...].astype(jnp.float32)            # upcast; supports bf16 HBM input
    scale = scale_ref[...][None, :, :]            # (1, c_tile, 1)
    shift = shift_ref[...][None, :, :]
    y = jnp.maximum(x * scale + shift, 0.0)       # BN (eval) + ReLU on the VPU

    hw = y.shape[-1]
    if hw % _LANE == 0 and hw > _LANE:
        # VPU-only partial sums over 128-lane chunks (static lane-aligned slices are
        # free); only one cross-lane (XLU) reduce per grid step.
        part = y[:, :, :_LANE]
        for k in range(1, hw // _LANE):
            part = part + y[:, :, k * _LANE:(k + 1) * _LANE]
        pooled = jnp.sum(part, axis=-1)           # (n_tile, c_tile)
    else:
        pooled = jnp.sum(y, axis=-1)

    # Partial Linear on the MXU; 1/(H*W) is folded into w.
    acc_ref[...] += jnp.dot(pooled, w_ref[...], preferred_element_type=jnp.float32)

    @pl.when(ci == pl.num_programs(1) - 1)
    def _():
        o_ref[...] = (acc_ref[...] + b_ref[...]).astype(o_ref.dtype)


def split_branch(x_nchw, params):
    """One branch classifier (BN->ReLU->GlobalAvgPool->Linear) via the Pallas kernel.

    x_nchw: (N, C, H, W), float32 or bfloat16.
    """
    gamma, beta, mu, var, w, b = params
    N, C, H, W = x_nchw.shape
    HW = H * W
    nclass = w.shape[1]

    # Pure reshape (no transpose): NCHW -> (N, C, HW); HW lands on the lane axis.
    x = x_nchw.reshape(N, C, HW)
    x_bytes = jnp.dtype(x.dtype).itemsize

    # Fold BN running stats into scale/shift; fold 1/(H*W) into the Linear weight.
    g32 = gamma.astype(jnp.float32)
    inv_std = jax.lax.rsqrt(var.astype(jnp.float32) + BN_EPS)
    scale = (g32 * inv_std).reshape(C, 1)
    shift = (beta.astype(jnp.float32) - mu.astype(jnp.float32) * g32 * inv_std).reshape(C, 1)

    k_pad = ((nclass + _LANE - 1) // _LANE) * _LANE
    w_p = jnp.zeros((C, k_pad), jnp.float32).at[:, :nclass].set(
        w.astype(jnp.float32) / jnp.float32(HW))
    b_p = jnp.zeros((1, k_pad), jnp.float32).at[:, :nclass].set(b.astype(jnp.float32))

    # ---- generation-aware tile sizing: ~VMEM/8 per x block (16 MiB on v5e/v6e,
    #      8 MiB on v7x), batch-first fill; tile C only if a full-C slab overflows.
    vmem_cap = _vmem_capacity_bytes()
    block_budget = max(2 << 20, min(16 << 20, vmem_cap // 8))
    n_tile = _pick_n_tile(N, C * HW * x_bytes, block_budget)
    c_tile = _pick_c_tile(C, n_tile, HW, x_bytes, block_budget)

    x_block = n_tile * c_tile * HW * x_bytes
    param_block = (2 * c_tile + c_tile * k_pad + k_pad) * 4
    out_block = n_tile * k_pad * 4
    resident = 2 * x_block + 2 * param_block + 2 * out_block + n_tile * k_pad * 4
    vmem_limit = int(min(max(32 << 20, resident + (4 << 20)), vmem_cap * 3 // 4))
    vmem_limit = max(vmem_limit, resident + (1 << 20))

    grid = (N // n_tile, C // c_tile)

    cost = pl.CostEstimate(
        flops=3 * N * C * HW + 2 * N * C * k_pad,
        transcendentals=0,
        bytes_accessed=N * C * HW * x_bytes + (2 * C + C * k_pad + k_pad) * 4
        + N * k_pad * 4,
    )

    # TODO(synk): the invariant operands (scale/shift/w_p/b_p) could take
    #             pipeline_mode=pl.Buffered(1); left at the default (tiny footprint).
    out = pl.pallas_call(
        _split_branch_kernel,
        out_shape=jax.ShapeDtypeStruct((N, k_pad), jnp.float32),
        grid=grid,
        in_specs=[
            pl.BlockSpec((n_tile, c_tile, HW), lambda ni, ci: (ni, ci, 0)),
            pl.BlockSpec((c_tile, 1), lambda ni, ci: (ci, 0)),
            pl.BlockSpec((c_tile, 1), lambda ni, ci: (ci, 0)),
            pl.BlockSpec((c_tile, k_pad), lambda ni, ci: (ci, 0)),
            pl.BlockSpec((1, k_pad), lambda ni, ci: (0, 0)),
        ],
        out_specs=pl.BlockSpec((n_tile, k_pad), lambda ni, ci: (ni, 0)),
        scratch_shapes=[pltpu.VMEM((n_tile, k_pad), jnp.float32)],
        compiler_params=pltpu.CompilerParams(
            dimension_semantics=("parallel", "arbitrary"),
            vmem_limit_bytes=vmem_limit,
        ),
        cost_estimate=cost,
    )(x, scale, shift, w_p, b_p)

    return out[:, :nclass]


# ---------------------------- module-level glue ----------------------------

def make_rock_summary_params(indepth, nclass, key):
    """Deterministic parameter init for method='split'. params[b-1] is classifier{b}."""
    params = []
    for c in indepth:
        key, k1, k2, k3, k4, k5, k6 = jax.random.split(key, 7)
        gamma = jax.random.uniform(k1, (c,), jnp.float32, 0.5, 1.5)
        beta = 0.1 * jax.random.normal(k2, (c,), jnp.float32)
        run_mean = 0.1 * jax.random.normal(k3, (c,), jnp.float32)
        run_var = jax.random.uniform(k4, (c,), jnp.float32, 0.5, 1.5)
        w = jax.random.normal(k5, (c, nclass), jnp.float32) / jnp.sqrt(jnp.float32(c))
        b = 0.01 * jax.random.normal(k6, (nclass,), jnp.float32)
        params.append((gamma, beta, run_mean, run_var, w, b))
    return params


def rock_summary_forward(x_list, params):
    """Matches RockSummary.forward for method='split'.

    x_list = [f1, f2, ..., fB, pred]   (features in NCHW; pred is a python list)
    """
    feats, pred = x_list[:-1][::-1], x_list[-1]
    pred = list(pred)
    for i, xi in enumerate(feats):
        branch_idx = len(feats) - i          # classifier{branch_idx}, 1-based
        pred.append(split_branch(xi, params[branch_idx - 1]))
    return pred


def _reference_branch(x_nchw, params):
    """Pure-JAX reference for correctness checking."""
    gamma, beta, mu, var, w, b = params
    inv_std = jax.lax.rsqrt(var + BN_EPS)
    y = (x_nchw - mu[None, :, None, None]) * (gamma * inv_std)[None, :, None, None] \
        + beta[None, :, None, None]
    y = jnp.maximum(y, 0.0)
    pooled = jnp.mean(y, axis=(2, 3))        # (N, C)
    return pooled @ w + b


if __name__ == "__main__":
    key = jax.random.PRNGKey(0)

    # Small configuration consistent with the module:
    branch = 3
    indepth = (8, 16, 32)          # channels per branch (len == branch)
    insize = 16                    # f1 spatial size; pyramid halves per branch
    nclass = 10
    N = 2
    sizes = [insize, insize // 2, insize // 4]     # 16, 8, 4

    key, *fkeys = jax.random.split(key, branch + 1)
    feats = [jax.random.normal(fkeys[i], (N, indepth[i], sizes[i], sizes[i]), jnp.float32)
             for i in range(branch)]

    key, pkey = jax.random.split(key)
    params = make_rock_summary_params(indepth, nclass, pkey)

    # forward: x = [f1, f2, f3, pred]  with pred an (initially empty) list
    pred_in = []
    outputs = rock_summary_forward(feats + [pred_in], params)
    for o in outputs:
        jax.block_until_ready(o)

    # Correctness check against the pure-JAX reference (same branch ordering).
    feats_rev = feats[::-1]
    for i, o in enumerate(outputs):
        bidx = branch - i                     # classifier index (1-based)
        ref = _reference_branch(feats_rev[i], params[bidx - 1])
        assert o.shape == (N, nclass)
        assert jnp.allclose(o, ref, atol=1e-4, rtol=1e-4), f"branch {bidx} mismatch"

    # bf16 feature-map path (kernel upcasts to f32 internally); compare against the
    # f32 reference evaluated on the same bf16-rounded input.
    x_bf = feats[0].astype(jnp.bfloat16)
    o_bf = split_branch(x_bf, params[0])
    jax.block_until_ready(o_bf)
    ref_bf = _reference_branch(x_bf.astype(jnp.float32), params[0])
    assert jnp.allclose(o_bf, ref_bf, atol=1e-3, rtol=1e-3), "bf16 branch mismatch"

    print("KERNEL_OK")
</pallas_src>

<mosaic_0001>
module attributes {stable_mosaic.version = 11 : i64} {
  func.func @_split_branch_kernel(%arg0: i32, %arg1: i32, %arg2: memref<2x32x16xf32, #tpu.memory_space<vmem>>, %arg3: memref<32x1xf32, #tpu.memory_space<vmem>>, %arg4: memref<32x1xf32, #tpu.memory_space<vmem>>, %arg5: memref<32x128xf32, #tpu.memory_space<vmem>>, %arg6: memref<1x128xf32, #tpu.memory_space<vmem>>, %arg7: memref<2x128xf32, #tpu.memory_space<vmem>>, %arg8: memref<2x128xf32, #tpu.memory_space<vmem>>) attributes {dimension_semantics = [#tpu.dimension_semantics<parallel>, #tpu.dimension_semantics<arbitrary>], iteration_bounds = array<i64: 1, 1>, scalar_prefetch = 0 : i64, scratch_operands = 1 : i64, tpu.core_type = #tpu.core_type<tc>, window_params = [{transform_indices = @transform_0, window_bounds = array<i64: 2, 32, 16>}, {transform_indices = @transform_1, window_bounds = array<i64: 32, 1>}, {transform_indices = @transform_2, window_bounds = array<i64: 32, 1>}, {transform_indices = @transform_3, window_bounds = array<i64: 32, 128>}, {pipeline_mode = #tpu.pipeline_mode<synchronous>, transform_indices = @transform_4, window_bounds = array<i64: 1, 128>}, {transform_indices = @transform_5, window_bounds = array<i64: 2, 128>}]} {
    %c0_i32 = arith.constant 0 : i32
    %0 = arith.cmpi eq, %arg1, %c0_i32 : i32
    %1 = arith.extui %0 : i1 to i32
    %c0_i32_0 = arith.constant 0 : i32
    %2 = arith.cmpi ne, %1, %c0_i32_0 : i32
    scf.if %2 {
      %cst_17 = arith.constant 0.000000e+00 : f32
      %23 = vector.broadcast %cst_17 : f32 to vector<2x128xf32>
      %c0_18 = arith.constant 0 : index
      %c0_19 = arith.constant 0 : index
      %24 = vector.load %arg8[%c0_18, %c0_19] : memref<2x128xf32, #tpu.memory_space<vmem>>, vector<2x128xf32>
      tpu.vector_store %arg8[%c0_18, %c0_19], %23 {strides = array<i32>} : memref<2x128xf32, #tpu.memory_space<vmem>>, vector<2x128xf32>,
    } else {
    }
    %c0 = arith.constant 0 : index
    %c0_1 = arith.constant 0 : index
    %c0_2 = arith.constant 0 : index
    %3 = vector.load %arg2[%c0, %c0_1, %c0_2] : memref<2x32x16xf32, #tpu.memory_space<vmem>>, vector<2x32x16xf32>
    %c0_3 = arith.constant 0 : index
    %c0_4 = arith.constant 0 : index
    %4 = vector.load %arg3[%c0_3, %c0_4] : memref<32x1xf32, #tpu.memory_space<vmem>>, vector<32x1xf32>
    %5 = vector.shape_cast %4 : vector<32x1xf32> to vector<1x32x1xf32>
    %c0_5 = arith.constant 0 : index
    %c0_6 = arith.constant 0 : index
    %6 = vector.load %arg4[%c0_5, %c0_6] : memref<32x1xf32, #tpu.memory_space<vmem>>, vector<32x1xf32>
    %7 = vector.shape_cast %6 : vector<32x1xf32> to vector<1x32x1xf32>
    %8 = vector.broadcast %5 : vector<1x32x1xf32> to vector<2x32x16xf32>
    %9 = arith.mulf %3, %8 : vector<2x32x16xf32>
    %10 = vector.broadcast %7 : vector<1x32x1xf32> to vector<2x32x16xf32>
    %11 = arith.addf %9, %10 : vector<2x32x16xf32>
    %cst = arith.constant 0.000000e+00 : f32
    %12 = vector.broadcast %cst : f32 to vector<2x32x16xf32>
    %13 = arith.maximumf %11, %12 : vector<2x32x16xf32>
    %cst_7 = arith.constant dense<0.000000e+00> : vector<2x32xf32>
    %14 = vector.multi_reduction <add>, %13, %cst_7 [2] : vector<2x32x16xf32> to vector<2x32xf32>
    %c0_8 = arith.constant 0 : index
    %c0_9 = arith.constant 0 : index
    %15 = vector.load %arg8[%c0_8, %c0_9] : memref<2x128xf32, #tpu.memory_space<vmem>>, vector<2x128xf32>
    %c0_10 = arith.constant 0 : index
    %c0_11 = arith.constant 0 : index
    %16 = vector.load %arg5[%c0_10, %c0_11] : memref<32x128xf32, #tpu.memory_space<vmem>>, vector<32x128xf32>
    %cst_12 = arith.constant dense<0.000000e+00> : vector<2x128xf32>
    %17 = tpu.matmul %14, %16, %cst_12 {dimension_numbers = #tpu.dot_dimension_numbers<[1], [0], [0], [1], [0, 0, 1, 1], [], []>} : vector<2x32xf32>, vector<32x128xf32>, vector<2x128xf32> -> vector<2x128xf32>
    %18 = arith.addf %15, %17 : vector<2x128xf32>
    %c0_13 = arith.constant 0 : index
    %c0_14 = arith.constant 0 : index
    %19 = vector.load %arg8[%c0_13, %c0_14] : memref<2x128xf32, #tpu.memory_space<vmem>>, vector<2x128xf32>
    tpu.vector_store %arg8[%c0_13, %c0_14], %18 {strides = array<i32>} : memref<2x128xf32, #tpu.memory_space<vmem>>, vector<2x128xf32>,
    %c0_i32_15 = arith.constant 0 : i32
    %20 = arith.cmpi eq, %arg1, %c0_i32_15 : i32
    %21 = arith.extui %20 : i1 to i32
    %c0_i32_16 = arith.constant 0 : i32
    %22 = arith.cmpi ne, %21, %c0_i32_16 : i32
    scf.if %22 {
      %c0_17 = arith.constant 0 : index
      %c0_18 = arith.constant 0 : index
      %23 = vector.load %arg8[%c0_17, %c0_18] : memref<2x128xf32, #tpu.memory_space<vmem>>, vector<2x128xf32>
      %c0_19 = arith.constant 0 : index
      %c0_20 = arith.constant 0 : index
      %24 = vector.load %arg6[%c0_19, %c0_20] : memref<1x128xf32, #tpu.memory_space<vmem>>, vector<1x128xf32>
      %25 = vector.broadcast %24 : vector<1x128xf32> to vector<2x128xf32>
      %26 = arith.addf %23, %25 : vector<2x128xf32>
      %c0_21 = arith.constant 0 : index
      %c0_22 = arith.constant 0 : index
      %27 = vector.load %arg7[%c0_21, %c0_22] : memref<2x128xf32, #tpu.memory_space<vmem>>, vector<2x128xf32>
      tpu.vector_store %arg7[%c0_21, %c0_22], %26 {strides = array<i32>} : memref<2x128xf32, #tpu.memory_space<vmem>>, vector<2x128xf32>,
    } else {
    }
    return
  }
  func.func @transform_0(%arg0: i32, %arg1: i32) -> (i32, i32, i32) {
    %c0_i32 = arith.constant 0 : i32
    %c0_i32_0 = arith.constant 0 : i32
    return %arg0, %arg1, %c0_i32 : i32, i32, i32
  }
  func.func @transform_1(%arg0: i32, %arg1: i32) -> (i32, i32) {
    %c0_i32 = arith.constant 0 : i32
    %c0_i32_0 = arith.constant 0 : i32
    return %arg1, %c0_i32 : i32, i32
  }
  func.func @transform_2(%arg0: i32, %arg1: i32) -> (i32, i32) {
    %c0_i32 = arith.constant 0 : i32
    %c0_i32_0 = arith.constant 0 : i32
    return %arg1, %c0_i32 : i32, i32
  }
  func.func @transform_3(%arg0: i32, %arg1: i32) -> (i32, i32) {
    %c0_i32 = arith.constant 0 : i32
    %c0_i32_0 = arith.constant 0 : i32
    return %arg1, %c0_i32 : i32, i32
  }
  func.func @transform_4(%arg0: i32, %arg1: i32) -> (i32, i32) {
    %c0_i32 = arith.constant 0 : i32
    %c0_i32_0 = arith.constant 0 : i32
    %c0_i32_1 = arith.constant 0 : i32
    return %c0_i32, %c0_i32_0 : i32, i32
  }
  func.func @transform_5(%arg0: i32, %arg1: i32) -> (i32, i32) {
    %c0_i32 = arith.constant 0 : i32
    %c0_i32_0 = arith.constant 0 : i32
    return %arg0, %c0_i32 : i32, i32
  }
}

</mosaic_0001>

<bundles_post_ra>
// kernel: tpu_custom_call.1
= control target key start
LH: loop header
LB: loop body
LE: loop exit
PB: predicated region body
PF: predicated region fallthrough
CT: control target
= control target key end

     0   :  { %v349_v2 = vmov 0   ;;  %s467_s0 = inlined_call_operand.vmem [shape: f32[2,32,16], index: 0, kind: input, shape index: {}]   ;;  %s468_s1 = inlined_call_operand.vmem [shape: f32[32,1], index: 1, kind: input, shape index: {}]   ;;  %s469_s2 = inlined_call_operand.vmem [shape: f32[32,1], index: 2, kind: input, shape index: {}]   ;;  %s470_s3 = inlined_call_operand.vmem [shape: f32[32,128], index: 3, kind: input, shape index: {}]   ;;  %s471_s4 = inlined_call_operand.vmem [shape: f32[1,128], index: 4, kind: input, shape index: {}]   ;;  %s472_s5 = inlined_call_operand.hbm [shape: f32[2,128], index: 5, kind: output, shape index: {}]  }
   0x1   :  { %v36_v0 = vld [vmem:[%s468_s1 + $0x10] sm:$0xff]  ;;  %v34_v1 = vld [vmem:[%s468_s1] sm:$0xff]  ;;  %324 = vset.pattern.permute.xlu1 %v349_v2  ;;  %323 = vset.pattern.permute.xlu0 %v349_v2  ;;  %v37_v3 = vld [vmem:[%s468_s1 + $0x18] sm:$0xff] }
   0x2   :  { %54 = vperm.xlu1 %324, %v36_v0   ;;  %44 = vperm.xlu0 %323, %v34_v1   ;;  %v35_v4 = vld [vmem:[%s468_s1 + $0x8] sm:$0xff] }
   0x3   :  { %10 = vsyncpa [#allocation4], 0  ;;  %v39_v5 = vld [vmem:[%s469_s2 + $0x8] sm:$0xff]  ;;  %v38_v6 = vld [vmem:[%s469_s2] sm:$0xff]  ;;  %vm106_vm0 = vcmask 130048   ;;  %v350_v60 = vmov 0.0|0.0   ;;  %v144_v1 = vlaneseq }
   0x4   :  { %v41_v7 = vld [vmem:[%s469_s2 + $0x18] sm:$0xff]  ;;  %v40_v8 = vld [vmem:[%s469_s2 + $0x10] sm:$0xff]  ;;  %v26_v11 = vld [vmem:[%s467_s0] sm:$0xff]  ;;  %312 = vmatprep.subr.bf16.mxu0 %v350_v60  ;;  %v351_v0 = vmov 0.0   ;;  %vm352_vm1 = vmmov 0   ;;  %vm155_vm2 = vcmask 130112  }
   0x5   :  { %v27_v14 = vld [vmem:[%s467_s0 + $0x8] sm:$0xff]  ;;  %v30_v15 = vld [vmem:[%s467_s0 + $0x20] sm:$0xff]  ;;  %v28_v18 = vld [vmem:[%s467_s0 + $0x10] sm:$0xff]  ;;  %25 = vst [vmem:[#allocation2] sm:$0x3] %v351_v0  ;;  %309 = vmatprep.mubr.msk.f32.mxu0 %vm352_vm1, %v351_v0  ;;  %vm162_vm3 = vcmask 195712  }
   0x6   :  { %59 = vperm.xlu1 %324, %v37_v3   ;;  %49 = vperm.xlu0 %323, %v35_v4   ;;  %v31_v20 = vld [vmem:[%s467_s0 + $0x28] sm:$0xff]  ;;  %v29_v23 = vld [vmem:[%s467_s0 + $0x18] sm:$0xff]  ;;  %v32_v34 = vld [vmem:[%s467_s0 + $0x30] sm:$0xff]  ;;  %v145_v4 = vand.u32 127, %v144_v1  ;;  %vm169_vm4 = vcmask 261312   ;;  %vm190_vm5 = vcmask 1041409  }
   0x7   :  { %v33_v43 = vld [vmem:[%s467_s0 + $0x38] sm:$0xff]  ;;  %v132_v57 = vld [vmem:[%s470_s3] sm:$0xff]  ;;  %v133_v58 = vld [vmem:[%s470_s3 + $0x8] sm:$0xff]  ;;  %vm192_vm6 = vcmask 261120   ;;  %s353_s6 = smov [#allocation3]  }
   0x8   :  { %v313_v59 = vpack.c.bf16 %v133_v58, %v132_v57  ;;  %v134_v61 = vld [vmem:[%s470_s3 + $0x10] sm:$0xff]  ;;  %v135_v62 = vld [vmem:[%s470_s3 + $0x18] sm:$0xff]  ;;  %s286_s7 = sshll.u32 %s353_s6, 4  ;;  %s287_s7 = int_to_ptr.vmem [resolvable:$true] %s286_s7 }
   0x9   :  { %v316_v63 = vpack.c.bf16 %v135_v62, %v134_v61  ;;  %s325_s8 = scalar_lea.vmem %s287_s7, 32  ;;  %p330_p1 = scmp.lt.s32.totalorder %s287_s7, %s287_s7 }
   0xa   :  { %77 = vperm.xlu1 %324, %v39_v5   ;;  %72 = vperm.xlu0 %323, %v38_v6   ;;  %v147_v6 = vshrl.u32 %v144_v1, 7  ;;  %p326_p0 = scmp.ne.s32.totalorder %s287_s7, %s325_s8  ;;  %p331_p2 = scmp.lt.s32.totalorder %s325_s8, %s325_s8 }
   0xb   :  { %314 = vmatpush3.bf16.msra.mxu0 %v313_v59 }
   0xc   :  { %315 = vmatprep.subr.bf16.mxu0 %v350_v60  ;;  %p332_p3 = por %p331_p2, %p330_p1 }
   0xe   :  { %87 = vperm.xlu1 %324, %v41_v7   ;;  %82 = vperm.xlu0 %323, %v40_v8   ;;  %v150_v7 = vadd.s32 4294967288, %v145_v4  ;;  %v157_v8 = vadd.s32 4294967280, %v145_v4  ;;  %p333_p4 = pnand %p332_p3, %p326_p0 }
   0xf   :  { %317 = vmatpush3.bf16.msra.mxu0 %v316_v63 }
  0x81   :  { %v55_v9 = vpop.permute.xlu1 %54  ;;  %v45_v10 = vpop.permute.xlu0 %44 }
  0x82   :  { %v62_v16 = vmul.f32 %v45_v10, %v26_v11  ;;  %v66_v19 = vmul.f32 %v45_v10, %v30_v15  ;;  %v64_v27 = vmul.f32 %v55_v9, %v28_v18  ;;  %v68_v42 = vmul.f32 %v55_v9, %v32_v34  ;;  %v131_v34 = vld [vmem:[#allocation2] sm:$0x3] }
  0x83   :  { %v164_v10 = vadd.s32 4294967272, %v145_v4 }
  0x85   :  { %v60_v12 = vpop.permute.xlu1 %59  ;;  %v50_v13 = vpop.permute.xlu0 %49  ;;  %v167_v15 = vsub.s32 %v164_v10, %v147_v6 }
  0x86   :  { %v63_v17 = vmul.f32 %v50_v13, %v27_v14  ;;  %v67_v28 = vmul.f32 %v50_v13, %v31_v20  ;;  %v65_v31 = vmul.f32 %v60_v12, %v29_v23  ;;  %v69_v49 = vmul.f32 %v60_v12, %v33_v43 }
  0x87   :  { %v153_v12 = vsub.s32 %v150_v7, %v147_v6  ;;  %v148_v13 = vsub.s32 %v145_v4, %v147_v6  ;;  %v160_v14 = vsub.s32 %v157_v8, %v147_v6 }
  0x89   :  { %v78_v21 = vpop.permute.xlu1 %77  ;;  %v73_v22 = vpop.permute.xlu0 %72 }
  0x8a   :  { %v91_v24 = vadd.f32 %v78_v21, %v63_v17  ;;  %v90_v25 = vadd.f32 %v73_v22, %v62_v16  ;;  %v94_v26 = vadd.f32 %v73_v22, %v66_v19  ;;  %v95_v35 = vadd.f32 %v78_v21, %v67_v28 }
  0x8c   :  { %v99_v29 = vmax.f32 %v91_v24, 0.0  ;;  %v98_v30 = vmax.f32 %v90_v25, 0.0  ;;  %v102_v37 = vmax.f32 %v94_v26, 0.0  ;;  %v103_v45 = vmax.f32 %v95_v35, 0.0 }
  0x8d   :  { %v88_v32 = vpop.permute.xlu1 %87  ;;  %v83_v33 = vpop.permute.xlu0 %82 }
  0x8e   :  { %v92_v36 = vadd.f32 %v83_v33, %v64_v27  ;;  %v93_v38 = vadd.f32 %v88_v32, %v65_v31  ;;  %v110_v39 = vsel %vm106_vm0, %v99_v29, 0.0  ;;  %v107_v40 = vsel %vm106_vm0, %v98_v30, 0.0 }
  0x8f   :  { %111 = vadd.xlane.f32.xlu1 %v110_v39  ;;  %108 = vadd.xlane.f32.xlu0 %v107_v40  ;;  %v96_v47 = vadd.f32 %v83_v33, %v68_v42  ;;  %v119_v48 = vsel %vm106_vm0, %v102_v37, 0.0  ;;  %v97_v50 = vadd.f32 %v88_v32, %v69_v49  ;;  %v122_v53 = vsel %vm106_vm0, %v103_v45, 0.0 }
  0x90   :  { %v100_v41 = vmax.f32 %v92_v36, 0.0  ;;  %v101_v46 = vmax.f32 %v93_v38, 0.0  ;;  %v295_v38 = vld [vmem:[%s471_s4] ss:$0 sm:$0xff] }
  0x91   :  { %v104_v51 = vmax.f32 %v96_v47, 0.0  ;;  %v105_v54 = vmax.f32 %v97_v50, 0.0 }
  0x92   :  { %v113_v44 = vsel %vm106_vm0, %v100_v41, 0.0  ;;  %v116_v52 = vsel %vm106_vm0, %v101_v46, 0.0 }
  0x93   :  { %114 = vadd.xlane.f32.xlu1 %v113_v44  ;;  %120 = vadd.xlane.f32.xlu0 %v119_v48  ;;  %v125_v55 = vsel %vm106_vm0, %v104_v51, 0.0  ;;  %v128_v56 = vsel %vm106_vm0, %v105_v54, 0.0 }
  0x97   :  { %117 = vadd.xlane.f32.xlu1 %v116_v52  ;;  %123 = vadd.xlane.f32.xlu0 %v122_v53 }
  0x9b   :  { %126 = vadd.xlane.f32.xlu0 %v125_v55 }
  0x9f   :  { %129 = vadd.xlane.f32.xlu0 %v128_v56 }
 0x11c   :  { %v112_v2 = vpop.xlane.xlu1 %111  ;;  %v109_v3 = vpop.xlane.xlu0 %108 }
 0x11d   :  { %v154_v18 = vrot.slane %v112_v2, %v153_v12  ;;  %v149_v19 = vrot.slane %v109_v3, %v148_v13 }
 0x11f   :  { %v156_v26 = vsel %vm155_vm2, %v154_v18, %v149_v19 }
 0x120   :  { %v121_v5 = vpop.xlane.xlu0 %120  ;;  %v115_v9 = vpop.xlane.xlu1 %114 }
 0x121   :  { %v161_v21 = vrot.slane %v115_v9, %v160_v14  ;;  %v174_v23 = vrot.slane %v121_v5, %v148_v13 }
 0x123   :  { %v163_v29 = vsel %vm162_vm3, %v161_v21, %v156_v26 }
 0x124   :  { %v124_v11 = vpop.xlane.xlu0 %123  ;;  %v118_v16 = vpop.xlane.xlu1 %117 }
 0x125   :  { %v178_v20 = vrot.slane %v124_v11, %v153_v12  ;;  %v168_v24 = vrot.slane %v118_v16, %v167_v15 }
 0x127   :  { %v179_v27 = vsel %vm155_vm2, %v178_v20, %v174_v23  ;;  %v170_v31 = vsel %vm169_vm4, %v168_v24, %v163_v29 }
 0x128   :  { %v127_v17 = vpop.xlane.xlu0 %126 }
 0x129   :  { %v183_v22 = vrot.slane %v127_v17, %v160_v14 }
 0x12b   :  { %v184_v30 = vsel %vm162_vm3, %v183_v22, %v179_v27 }
 0x12c   :  { %v130_v25 = vpop.xlane.xlu0 %129 }
 0x12d   :  { %v188_v28 = vrot.slane %v130_v25, %v167_v15 }
 0x12f   :  { %v189_v32 = vsel %vm169_vm4, %v188_v28, %v184_v30 }
 0x130   :  { %v191_v33 = vsel %vm190_vm5, %v189_v32, %v170_v31 }
 0x131   :  { %310 = vmatmul.mubr.msk.f32.vlgmr.msra.gmra.mrb[0].mxu0 %vm192_vm6, %v191_v33 }
 0x204   :  { %v261_v35 = vpop.f32.mrb[0].mxu0 }
 0x205   :  { %v265_v36 = vadd.f32 %v261_v35, %v131_v34  ;;  %v311_v37 = vpop.f32.mrb[1].mxu0 }
 0x207   :  { %266 = vst [vmem:[#allocation2] sm:$0x3] %v265_v36 }
 0x20e   :  { %v270_v39 = vld [vmem:[#allocation2] sm:$0x3] }
 0x20f   :  { %v278_v40 = vadd.f32 %v295_v38, %v270_v39 }
 0x211   :  { %279 = vst [vmem:[#allocation3] sm:$0x3] %v278_v40 }
 0x212   :  { %336 = shalt.err (!%p333_p4)
}
 0x213   :  { %s337_s10 = scalar_lea.hbm %s472_s5, 32 }
 0x214   :  { %p338_p5 = scmp.ne.s32.totalorder %s472_s5, %s337_s10  ;;  %p341_p6 = scmp.lt.u32.totalorder %s337_s10, %s472_s5 }
 0x216   :  { %p343_p7 = pnand %p341_p6, %p338_p5 }
 0x218   :  { %346 = shalt.err (!%p343_p7)
}
 0x219   :  { %289 = dma.vmem_to_hbm [thread:$0]  %s287_s7, 32, %s472_s5, [#allocation4]  }
 0x21a   :  { %347 = dma.done.wait [#allocation4], 32  }
 0x21b   :  { %348 = vsyncadd [#allocation4], 4294967264 }
 0x21c   :  { %293 = vsyncpa [#allocation4], 1 }

</bundles_post_ra>
